<compile_context>
chip_gen: v5e
topology: v5e:2x2
jax: 0.10.0
libtpu: 0.0.40
codegen_flags: <defaults>
</compile_context>

<pallas_src>
import numpy as np
import jax
import jax.numpy as jnp
from jax import lax
from jax.experimental import pallas as pl
from jax.experimental.pallas import tpu as pltpu


def _smooth_loss_kernel(fai_ref, mask_ref, out_ref):
    """One grid step: `bb` samples x 2 channels, 64x64 folded to (32, 128).

    fai_ref : (bb, 2, 32, 128) block in the input dtype
    mask_ref: (32, 128) f32 interior mask (resident; constant index_map)
    out_ref : (1, 32, 128) f32 per-block masked per-pixel partial sums
    """
    bb, c, S, L = fai_ref.shape
    n = bb * c
    half = L // 2  # = 64 = original W; lane < 64 <=> even original row

    # Fold (sample, channel); last two dims untouched -> layout-free reshape.
    # Cast to f32 in-kernel (mandatory on v5e for bf16 inputs; no-op for f32).
    x = fai_ref[...].reshape(n, S, L).astype(jnp.float32)

    low = lax.broadcasted_iota(jnp.int32, (n, S, L), 2) < half

    # Vertical neighbors: swap the two 64-lane halves (orig rows 2k <-> 2k+1),
    # then a +/-1 sublane roll supplies the cross-sublane cases.
    swap = pltpu.roll(x, shift=half, axis=2)
    up = jnp.where(low, pltpu.roll(swap, shift=1, axis=1), swap)        # row i-1
    d = jnp.abs(x - up)
    down = jnp.where(low, swap, pltpu.roll(swap, shift=S - 1, axis=1))  # row i+1
    d = d + jnp.abs(x - down)

    # Horizontal neighbors: lane rolls by +/-1 (wrap only hits masked columns).
    d = d + jnp.abs(x - pltpu.roll(x, shift=1, axis=2))      # col j-1
    d = d + jnp.abs(x - pltpu.roll(x, shift=L - 1, axis=2))  # col j+1

    # Reduce over the (major) sample/channel axis -> cheap VALU adds; keep the
    # (S, L) map vector-shaped (no per-step cross-lane scalar reduction).
    partial = jnp.sum(d, axis=0)  # (S, L)

    # Interior mask kills boundary pixels and all roll wrap-around terms.
    out_ref[...] = (partial * mask_ref[...])[None, :, :]


def _interior_mask_folded(S=32, L=128, H=64, W=64):
    """f32 (S, L) mask of the original interior window [1, H-2] x [1, W-2]."""
    r = np.arange(S)[:, None]
    c = np.arange(L)[None, :]
    i = 2 * r + (c >= W)  # original row index
    j = c % W             # original col index
    m = (i >= 1) & (i <= H - 2) & (j >= 1) & (j <= W - 2)
    return jnp.asarray(m, dtype=jnp.float32)


def _pick_block_batch(B, target):
    """Largest divisor of B that is <= target and leaves >= 2 grid steps."""
    if B <= 1:
        return max(B, 1)
    limit = min(target, B // 2)  # >= 2 blocks so both v7x TCs get work
    best = 1
    for d in range(1, limit + 1):
        if B % d == 0:
            best = d
    return best


def smooth_loss(fai, batch=None, *, block_batch=128):
    """Pallas TPU implementation of smooth_Loss.forward.

    fai: (B, C, 64, 64) float array, C >= 2 (only channels 0 and 1 contribute).
    `batch` is accepted for API parity but unused (as in the PyTorch module).
    Returns a (1,) float32 array, matching torch.tensor([0.]).
    """
    B, C, H, W = fai.shape
    assert H == 64 and W == 64, "smooth_Loss hardcodes 64x64 spatial maps"
    assert C >= 2, "smooth_Loss uses channels 0 and 1"

    S, L = (H * W) // 128, 128
    # Free, contiguous metadata reshape to a lane-dense working layout.
    fai = fai.reshape(B, C, S, L)
    mask = _interior_mask_folded(S, L, H, W)

    bb = _pick_block_batch(B, block_batch)
    nblk = B // bb

    partials = pl.pallas_call(
        _smooth_loss_kernel,
        out_shape=jax.ShapeDtypeStruct((nblk, S, L), jnp.float32),
        grid_spec=pltpu.PrefetchScalarGridSpec(
            num_scalar_prefetch=0,
            grid=(nblk,),
            in_specs=[
                # Channel block of 2 => only channels 0..1 are DMA'd from HBM,
                # no wrapper-side slice/copy even when C > 2.
                pl.BlockSpec((bb, 2, S, L), lambda b: (b, 0, 0, 0)),
                # Constant block index => mask stays resident after one DMA.
                pl.BlockSpec((S, L), lambda b: (0, 0)),
            ],
            out_specs=pl.BlockSpec((1, S, L), lambda b: (b, 0, 0)),
        ),
        compiler_params=pltpu.CompilerParams(
            dimension_semantics=("parallel",),   # independent per-block partials
            vmem_limit_bytes=48 * 1024 * 1024,   # headroom inside v7x's 64 MiB
        ),
    )(fai, mask)

    # Tiny final reduction (nblk * 32 * 128 f32) done by XLA outside the kernel.
    return jnp.sum(partials).reshape((1,))


def _reference(fai):
    # Pure-JAX reference matching the PyTorch triple loops.
    x = fai[:, :2, :, :].astype(jnp.float32)
    c = x[:, :, 1:63, 1:63]
    s = (jnp.abs(c - x[:, :, 0:62, 1:63])
         + jnp.abs(c - x[:, :, 2:64, 1:63])
         + jnp.abs(c - x[:, :, 1:63, 0:62])
         + jnp.abs(c - x[:, :, 1:63, 2:64])).sum()
    return s.reshape((1,))


if __name__ == "__main__":
    key = jax.random.PRNGKey(0)
    # Spatial size is fixed at 64 by the module; C=4 exercises the
    # BlockSpec-only channel restriction (only channels 0,1 contribute).
    B, C, H, W = 2, 4, 64, 64
    fai = jax.random.normal(key, (B, C, H, W), dtype=jnp.float32)
    batch = None  # unused by the loss, as in the PyTorch module

    out = smooth_loss(fai, batch)
    out = jax.block_until_ready(out)

    ref = _reference(fai)
    assert jnp.allclose(out, ref, rtol=1e-4, atol=1e-2), (out, ref)

    print("KERNEL_OK")
</pallas_src>

<mosaic_0001>
module attributes {stable_mosaic.version = 11 : i64} {
  func.func @_smooth_loss_kernel(%arg0: i32, %arg1: memref<1x2x32x128xf32, #tpu.memory_space<vmem>>, %arg2: memref<32x128xf32, #tpu.memory_space<vmem>>, %arg3: memref<1x32x128xf32, #tpu.memory_space<vmem>>) attributes {dimension_semantics = [#tpu.dimension_semantics<parallel>], iteration_bounds = array<i64: 2>, scalar_prefetch = 0 : i64, scratch_operands = 0 : i64, tpu.core_type = #tpu.core_type<tc>, window_params = [{transform_indices = @transform_0, window_bounds = array<i64: 1, 2, 32, 128>}, {pipeline_mode = #tpu.pipeline_mode<synchronous>, transform_indices = @transform_1, window_bounds = array<i64: 32, 128>}, {transform_indices = @transform_2, window_bounds = array<i64: 1, 32, 128>}]} {
    %c0 = arith.constant 0 : index
    %c0_0 = arith.constant 0 : index
    %c0_1 = arith.constant 0 : index
    %c0_2 = arith.constant 0 : index
    %0 = vector.load %arg1[%c0, %c0_0, %c0_1, %c0_2] : memref<1x2x32x128xf32, #tpu.memory_space<vmem>>, vector<1x2x32x128xf32>
    %1 = vector.shape_cast %0 : vector<1x2x32x128xf32> to vector<2x32x128xf32>
    %2 = tpu.iota {dimensions = array<i32: 2>} : vector<2x32x128xi32>
    %c64_i32 = arith.constant 64 : i32
    %3 = vector.broadcast %c64_i32 : i32 to vector<2x32x128xi32>
    %4 = arith.cmpi slt, %2, %3 : vector<2x32x128xi32>
    %c64_i32_3 = arith.constant 64 : i32
    %5 = tpu.dynamic_rotate %1 by %c64_i32_3 dim 2 : vector<2x32x128xf32>, i32 -> vector<2x32x128xf32>
    %c1_i32 = arith.constant 1 : i32
    %6 = tpu.dynamic_rotate %5 by %c1_i32 dim 1 : vector<2x32x128xf32>, i32 -> vector<2x32x128xf32>
    %7 = arith.select %4, %6, %5 : vector<2x32x128xi1>, vector<2x32x128xf32>
    %8 = arith.subf %1, %7 : vector<2x32x128xf32>
    %9 = math.absf %8 : vector<2x32x128xf32>
    %c31_i32 = arith.constant 31 : i32
    %10 = tpu.dynamic_rotate %5 by %c31_i32 dim 1 : vector<2x32x128xf32>, i32 -> vector<2x32x128xf32>
    %11 = arith.select %4, %5, %10 : vector<2x32x128xi1>, vector<2x32x128xf32>
    %12 = arith.subf %1, %11 : vector<2x32x128xf32>
    %13 = math.absf %12 : vector<2x32x128xf32>
    %14 = arith.addf %9, %13 : vector<2x32x128xf32>
    %c1_i32_4 = arith.constant 1 : i32
    %15 = tpu.dynamic_rotate %1 by %c1_i32_4 dim 2 : vector<2x32x128xf32>, i32 -> vector<2x32x128xf32>
    %16 = arith.subf %1, %15 : vector<2x32x128xf32>
    %17 = math.absf %16 : vector<2x32x128xf32>
    %18 = arith.addf %14, %17 : vector<2x32x128xf32>
    %c127_i32 = arith.constant 127 : i32
    %19 = tpu.dynamic_rotate %1 by %c127_i32 dim 2 : vector<2x32x128xf32>, i32 -> vector<2x32x128xf32>
    %20 = arith.subf %1, %19 : vector<2x32x128xf32>
    %21 = math.absf %20 : vector<2x32x128xf32>
    %22 = arith.addf %18, %21 : vector<2x32x128xf32>
    %cst = arith.constant dense<0.000000e+00> : vector<32x128xf32>
    %23 = vector.multi_reduction <add>, %22, %cst [0] : vector<2x32x128xf32> to vector<32x128xf32>
    %c0_5 = arith.constant 0 : index
    %c0_6 = arith.constant 0 : index
    %24 = vector.load %arg2[%c0_5, %c0_6] : memref<32x128xf32, #tpu.memory_space<vmem>>, vector<32x128xf32>
    %25 = arith.mulf %23, %24 : vector<32x128xf32>
    %26 = vector.shape_cast %25 : vector<32x128xf32> to vector<1x32x128xf32>
    %c0_7 = arith.constant 0 : index
    %c0_8 = arith.constant 0 : index
    %c0_9 = arith.constant 0 : index
    %27 = vector.load %arg3[%c0_7, %c0_8, %c0_9] : memref<1x32x128xf32, #tpu.memory_space<vmem>>, vector<1x32x128xf32>
    tpu.vector_store %arg3[%c0_7, %c0_8, %c0_9], %26 {strides = array<i32>} : memref<1x32x128xf32, #tpu.memory_space<vmem>>, vector<1x32x128xf32>,
    return
  }
  func.func @transform_0(%arg0: i32) -> (i32, i32, i32, i32) {
    %c0_i32 = arith.constant 0 : i32
    %c0_i32_0 = arith.constant 0 : i32
    %c0_i32_1 = arith.constant 0 : i32
    %c0_i32_2 = arith.constant 0 : i32
    return %arg0, %c0_i32, %c0_i32_0, %c0_i32_1 : i32, i32, i32, i32
  }
  func.func @transform_1(%arg0: i32) -> (i32, i32) {
    %c0_i32 = arith.constant 0 : i32
    %c0_i32_0 = arith.constant 0 : i32
    %c0_i32_1 = arith.constant 0 : i32
    return %c0_i32, %c0_i32_0 : i32, i32
  }
  func.func @transform_2(%arg0: i32) -> (i32, i32, i32) {
    %c0_i32 = arith.constant 0 : i32
    %c0_i32_0 = arith.constant 0 : i32
    %c0_i32_1 = arith.constant 0 : i32
    return %arg0, %c0_i32, %c0_i32_0 : i32, i32, i32
  }
}

</mosaic_0001>

<bundles_post_ra>
// kernel: tpu_custom_call.1
= control target key start
LH: loop header
LB: loop body
LE: loop exit
PB: predicated region body
PF: predicated region fallthrough
CT: control target
= control target key end

     0   :  { %7 = vsyncpa [#allocation3], 0  ;;  %s1088_s0 = inlined_call_operand.hbm [shape: f32[2,4,32,128], index: 0, kind: input, shape index: {}]   ;;  %s1089_s1 = inlined_call_operand.hbm [shape: f32[32,128], index: 1, kind: input, shape index: {}]   ;;  %s1090_s2 = inlined_call_operand.hbm [shape: f32[2,32,128], index: 2, kind: output, shape index: {}]  }
   0x1   :  { %9 = vsyncpa [#allocation3 + $0x1], 0 }
   0x2   :  { %10 = vsyncpa [#allocation6], 0 }
   0x3   :  { %11 = vsyncpa [#allocation4], 0 }
   0x4   :  { %13 = vsyncpa [#allocation4 + $0x1], 0  ;;  %s732_s9 = smov 0   ;;  %s734_s10 = smov 0  }
   0x5   :  { %s736_s11 = smov 0   ;;  %s738_s12 = smov 0  }
   0x6 LB: > { %s753_s13 = sadd.s32 4294967295, %s707_s12   ;;  %s495_s14 = sadd.s32 4294967294, %s707_s12   ;;  %s707_s12 = sphi %s738_s12, %s1100_s12   ;;  %s703_s11 = sphi %s736_s11, %s1099_s11   ;;  %s699_s10 = sphi %s734_s10, %s1098_s10   ;;  %s695_s9 = sphi %s732_s9, %s1097_s9  }
   0x7   : > { %p39_p0 = scmp.ne.s32.totalorder %s699_s10, %s695_s9  ;;  %p40_p1 = scmp.eq.s32.totalorder %s753_s13, 0 }
   0x8   : > { %p84_p2 = scmp.eq.s32.totalorder %s753_s13, 1  ;;  %p90_p3 = scmp.eq.s32.totalorder %s495_s14, 1 }
   0x9   : > { %p762_p4 = por %p40_p1, %p39_p0  ;;  %p496_p5 = scmp.ge.s32.totalorder %s707_s12, 1 }
   0xa   : > { %p767_p6 = por %p90_p3, %p39_p0  ;;  %p97_p7 = scmp.lt.s32.totalorder %s707_s12, 3 }
   0xb   : > { %s108_s19 = sshll.u32 %s1089_s1, 4  ;;  %s709_s21 = smov [#allocation5]   ;;  %s109_s19 = int_to_ptr.hbm [resolvable:$true] %s108_s19 }
   0xc   : > { %p775_p8 = pnand %p496_p5, %p97_p7  ;;  %s110_s22 = sshll.u32 %s709_s21, 4  ;;  %s111_s22 = int_to_ptr.vmem [resolvable:$true] %s110_s22 }
   0xd   : > { %s785_s23 = sadd.s32 1, %s707_s12   ;;  %s710_s24 = smov 128  }
   0xe   : > { %p521_p9 = pneg %p775_p8  ;;  %s711_s25 = smov 8  }
   0xf   : > { %s23_s26 = ssub.s32 %s707_s12, %s785_s23  ;;  %s26_s27 = sadd.s32 1, %s703_s11 }
  0x10   : > { %p522_p10 = pnand %p521_p9, %p40_p1  ;;  %p24_p12 = scmp.eq.s32.totalorder %s23_s26, 0 }
  0x11   : > { %p33_p13 = scmp.ne.s32.totalorder %s703_s11, %s699_s10  ;;  %p34_p0 = scmp.eq.s32.totalorder %s707_s12, 0 }
  0x12   : > { %524 = dma.hbm_to_vmem [thread:$0]  (!%p522_p10), %s109_s19, 512, %s111_s22, [#allocation6], %s710_s24, %s710_s24, %s711_s25  }
  0x13   : > { %s797_s28 = scalar_select %p24_p12, %s703_s11, %s26_s27  }
  0x14   : > { %p801_p3 = por %p84_p2, %p33_p13  ;;  %p534_p5 = scmp.lt.s32.totalorder %s707_s12, 2 }
  0x15   : > { %s124_s30 = sand.u32 1, %s703_s11   ;;  %s511_s3 = sshll.u32 %s707_s12, 7 }
  0x16   : > { %p35_p7 = por %p34_p0, %p33_p13  ;;  %s499_s4 = sshll.u32 %s124_s30, 6 }
  0x17   : > { %s133_s7 = scalar_lea.hbm %s1088_s0, %s511_s3  ;;  %s128_s14 = scalar_lea.vmem [#allocation2], %s499_s4 }
  0x18   : > { %s134_s8 = sshll.u32 %s133_s7, 4  ;;  %s136_s17 = sshll.u32 %s128_s14, 4  ;;  %s135_s8 = int_to_ptr.hbm [resolvable:$true] %s134_s8  ;;  %s137_s17 = int_to_ptr.vmem [resolvable:$true] %s136_s17 }
  0x19   : > { %p811_p9 = pnand %p534_p5, %p35_p7  ;;  %s125_s19 = scalar_lea.sflag [#allocation3], %s124_s30 }
  0x1a   : > { %s607_s21 = sshra.s32 %s135_s8, 4  ;;  %s614_s3 = scalar_lea.hbm %s1088_s0, 256  ;;  %s608_s21 = int_to_ptr.hbm [resolvable:$true] %s607_s21 }
  0x1b   : > { %s609_s22 = scalar_lea.hbm %s608_s21, 64  ;;  %p611_p10 = pneg %p811_p9 }
  0x1c   : > { %p610_p2 = scmp.ne.s32.totalorder %s608_s21, %s609_s22  ;;  %p615_p0 = scmp.lt.s32.totalorder %s608_s21, %s1088_s0 }
  0x1d   : > { %p616_p5 = scmp.lt.s32.totalorder %s614_s3, %s609_s22 }
  0x1e   : > { %p612_p12 = pnand %p611_p10, %p610_p2 }
  0x1f   : > { %p617_p7 = por %p616_p5, %p615_p0 }
  0x20   : > { %p613_p13 = pneg %p612_p12 }
  0x22   : > { %p618_p11 = pnand %p617_p7, %p613_p13 }
  0x24   : > { %621 = shalt.err (!%p618_p11)
}
  0x25   : > { %528 = dma.hbm_to_vmem [thread:$0]  (!%p811_p9), %s135_s8, 1024, %s137_s17, %s125_s19, %s710_s24, %s710_s24, %s711_s25  }
  0x26   : > { %148 = sbr.rel (%p775_p8) target bundleno = 233 (0xe9), region = 28  ;;  %s831_s30 = sand.u32 (!%p775_p8), 1, %s699_s10  }
  0x27   : > { %s503_s6 = sshll.u32 (!%p775_p8), %s831_s30, 6  ;;  %s151_s7 = scalar_lea.sflag (!%p775_p8), [#allocation3], %s831_s30 }
  0x28   : > { %s154_s14 = scalar_lea.vmem (!%p775_p8), [#allocation2], %s503_s6 }
  0x2b   : > { %682 = dma.done.wait (%p762_p4), %s151_s7, 1024  }
  0x2c   : > { %684 = vsyncadd (%p762_p4), %s151_s7, 4294966272 }
  0x2d   : > { %686 = dma.done.wait (%p40_p1), [#allocation6], 512  }
  0x2e   : > { %688 = vsyncadd (%p40_p1), [#allocation6], 4294966784  ;;  %v843_v0 = vld [vmem:[%s154_s14 + $0x10] sm:$0xff]  ;;  %v845_v1 = vld [vmem:[%s154_s14] sm:$0xff]  ;;  %s712_s20 = smov 64   ;;  %s713_s15 = smov 1   ;;  %v189_v16 = vlaneseq }
  0x2f   : > { %196 = vrot.lane.b32.xlu1 %v843_v0, %s712_s20  ;;  %192 = vrot.lane.b32.xlu0 %v845_v1, %s712_s20  ;;  %v849_v2 = vld [vmem:[%s154_s14 + $0x20] sm:$0xff]  ;;  %v852_v3 = vld [vmem:[%s154_s14 + $0x18] sm:$0xff]  ;;  %s714_s24 = smov 127   ;;  %s505_s25 = sshll.u32 %s831_s30, 5 }
  0x30   : > { %200 = vrot.lane.b32.xlu2 %v849_v2, %s712_s20  ;;  %v854_v4 = vld [vmem:[%s154_s14 + $0x8] sm:$0xff]  ;;  %v861_v6 = vld [vmem:[%s154_s14 + $0x38] sm:$0xff]  ;;  %v863_v7 = vld [vmem:[%s154_s14 + $0x30] sm:$0xff]  ;;  %v895_v18 = vshrl.u32 %v189_v16, 7  ;;  %v897_v19 = vand.u32 127, %v189_v16  ;;  %s1043_s8 = scalar_lea.vmem [#allocation7], %s505_s25 }
  0x31   : > { %v856_v5 = vld [vmem:[%s154_s14 + $0x28] sm:$0xff]  ;;  %s512_s17 = sshll.u32 %s753_s13, 5  ;;  %s409_s22 = sshll.u32 %s1043_s8, 4  ;;  %s410_s22 = int_to_ptr.vmem [resolvable:$true] %s409_s22 }
  0x32   : > { %vm259_vm0 = vcmp.lt.s32.totalorder %v895_v18, 7  ;;  %vm191_vm1 = vcmp.lt.s32.totalorder %v897_v19, 64  ;;  %vm218_vm2 = vcmp.lt.s32.totalorder %v895_v18, 1  ;;  %s408_s21 = scalar_lea.hbm %s1090_s2, %s512_s17  ;;  %s397_s26 = scalar_lea.sflag [#allocation4], %s831_s30 }
  0x33   : > { %s411_s13 = sshll.u32 %s408_s21, 4  ;;  %s657_s6 = scalar_lea.hbm %s1090_s2, 64  ;;  %s412_s13 = int_to_ptr.hbm [resolvable:$true] %s411_s13 }
  0x34   : > { %s651_s27 = sshra.s32 %s412_s13, 4  ;;  %s652_s27 = int_to_ptr.hbm [resolvable:$true] %s651_s27 }
  0x35   : > { %s653_s3 = scalar_lea.hbm %s652_s27, 32  ;;  %p658_p11 = scmp.lt.s32.totalorder %s652_s27, %s1090_s2 }
  0x36   : > { %p654_p1 = scmp.ne.s32.totalorder %s652_s27, %s653_s3  ;;  %p659_p9 = scmp.lt.s32.totalorder %s657_s6, %s653_s3 }
  0x37   : > { %198 = vrot.lane.b32.xlu1 %v852_v3, %s712_s20  ;;  %194 = vrot.lane.b32.xlu0 %v854_v4, %s712_s20 }
  0x38   : > { %202 = vrot.lane.b32.xlu2 %v856_v5, %s712_s20  ;;  %p655_p4 = pnand %p654_p1, %p801_p3  ;;  %p660_p2 = por %p659_p9, %p658_p11 }
  0x3a   : > { %p656_p8 = pneg %p655_p4 }
  0x3c   : > { %p661_p10 = pnand %p660_p2, %p656_p8 }
  0x3f   : > { %206 = vrot.lane.b32.xlu1 %v861_v6, %s712_s20  ;;  %204 = vrot.lane.b32.xlu0 %v863_v7, %s712_s20 }
  0x40   : > { %300 = vrot.lane.b32.xlu2 %v845_v1, %s713_s15 }
  0x47   : > { %304 = vrot.lane.b32.xlu1 %v843_v0, %s713_s15  ;;  %302 = vrot.lane.b32.xlu0 %v854_v4, %s713_s15 }
  0x48   : > { %306 = vrot.lane.b32.xlu2 %v852_v3, %s713_s15 }
  0x4f   : > { %310 = vrot.lane.b32.xlu1 %v856_v5, %s713_s15  ;;  %308 = vrot.lane.b32.xlu0 %v849_v2, %s713_s15 }
  0x50   : > { %312 = vrot.lane.b32.xlu2 %v863_v7, %s713_s15 }
  0x57   : > { %340 = vrot.lane.b32.xlu1 %v845_v1, %s714_s24  ;;  %314 = vrot.lane.b32.xlu0 %v861_v6, %s713_s15 }
  0x58   : > { %342 = vrot.lane.b32.xlu2 %v854_v4, %s714_s24 }
  0x5f   : > { %346 = vrot.lane.b32.xlu1 %v852_v3, %s714_s24  ;;  %344 = vrot.lane.b32.xlu0 %v843_v0, %s714_s24 }
  0x60   : > { %348 = vrot.lane.b32.xlu2 %v849_v2, %s714_s24 }
  0x67   : > { %352 = vrot.lane.b32.xlu1 %v863_v7, %s714_s24  ;;  %350 = vrot.lane.b32.xlu0 %v856_v5, %s714_s24 }
  0x68   : > { %354 = vrot.lane.b32.xlu2 %v861_v6, %s714_s24 }
  0x8a   : > { %v201_v8 = vpop.permute.xlu2 %200 }
  0x8b   : > { %v252_v22 = vrot.slane %v201_v8, 1  ;;  %v209_v29 = vrot.slane %v201_v8, 7 }
  0x92   : > { %v883_v9 = vpop.permute.xlu2 %202 }
  0x93   : > { %v254_v23 = vrot.slane %v883_v9, 1  ;;  %v211_v35 = vrot.slane %v883_v9, 7 }
  0x95   : > { %v265_v24 = vsel %vm259_vm0, %v252_v22, %v254_v23  ;;  %v224_v45 = vsel %vm218_vm2, %v209_v29, %v211_v35 }
  0x96   : > { %v272_v34 = vsel %vm191_vm1, %v201_v8, %v265_v24  ;;  %v952_v55 = vsel %vm191_vm1, %v224_v45, %v883_v9 }
  0x97   : > { %v280_v40 = vsub.f32 %v849_v2, %v272_v34 }
  0x99   : > { %v288_v59 = vand.u32 2147483647, %v280_v40 }
  0x9a   : > { %v301_v10 = vpop.permute.xlu2 %300 }
  0x9b   : > { %v316_v39 = vsub.f32 %v845_v1, %v301_v10 }
  0x9d   : > { %v324_v56 = vand.u32 2147483647, %v316_v39 }
  0xa1   : > { %v885_v11 = vpop.permute.xlu1 %196  ;;  %v193_v12 = vpop.permute.xlu0 %192 }
  0xa2   : > { %v887_v13 = vpop.permute.xlu2 %306  ;;  %v208_v30 = vrot.slane %v193_v12, 7  ;;  %v251_v31 = vrot.slane %v193_v12, 1  ;;  %v212_v46 = vrot.slane %v885_v11, 7  ;;  %v255_v61 = vrot.slane %v885_v11, 1 }
  0xa3   : > { %v319_v16 = vsub.f32 %v852_v3, %v887_v13 }
  0xa9   : > { %v889_v14 = vpop.permute.xlu1 %198  ;;  %v891_v15 = vpop.permute.xlu0 %194 }
  0xaa   : > { %v893_v17 = vpop.permute.xlu2 %312  ;;  %v214_v25 = vrot.slane %v889_v14, 7  ;;  %v253_v26 = vrot.slane %v891_v15, 1  ;;  %v257_v41 = vrot.slane %v889_v14, 1  ;;  %v210_v49 = vrot.slane %v891_v15, 7 }
  0xac   : > { %v225_v36 = vsel %vm218_vm2, %v214_v25, %v208_v30  ;;  %v264_v37 = vsel %vm259_vm0, %v251_v31, %v253_v26  ;;  %v219_v50 = vsel %vm218_vm2, %v212_v46, %v214_v25  ;;  %v266_v57 = vsel %vm259_vm0, %v257_v41, %v251_v31 }
  0xad   : > { %v227_v43 = vsel %vm191_vm1, %v225_v36, %v193_v12  ;;  %v268_v44 = vsel %vm191_vm1, %v193_v12, %v264_v37  ;;  %v230_v10 = vsel %vm191_vm1, %v219_v50, %v889_v14  ;;  %v223_v12 = vsel %vm218_vm2, %v208_v30, %v210_v49 }
  0xae   : > { %v235_v53 = vsub.f32 %v845_v1, %v227_v43  ;;  %v276_v54 = vsub.f32 %v845_v1, %v268_v44  ;;  %v260_v31 = vsel %vm259_vm0, %v255_v61, %v257_v41  ;;  %v221_v34 = vsel %vm218_vm2, %v210_v49, %v212_v46 }
  0xaf   : > { %v262_v36 = vsel %vm259_vm0, %v253_v26, %v255_v61  ;;  %v238_v39 = vsub.f32 %v852_v3, %v230_v10  ;;  %v270_v46 = vsel %vm191_vm1, %v885_v11, %v260_v31 }
  0xb1   : > { %v899_v20 = vpop.permute.xlu1 %206  ;;  %v901_v21 = vpop.permute.xlu0 %204 }
  0xb2   : > { %v215_v27 = vrot.slane %v899_v20, 7  ;;  %v913_v28 = vpop.permute.xlu2 %342  ;;  %v258_v47 = vrot.slane %v899_v20, 1  ;;  %v213_v48 = vrot.slane %v901_v21, 7  ;;  %v256_v24 = vrot.slane %v901_v21, 1 }
  0xb4   : > { %v226_v38 = vsel %vm218_vm2, %v215_v27, %v209_v29  ;;  %v267_v62 = vsel %vm259_vm0, %v258_v47, %v252_v22  ;;  %v220_v63 = vsel %vm218_vm2, %v213_v48, %v215_v27  ;;  %v271_v22 = vsel %vm191_vm1, %v889_v14, %v266_v57 }
  0xb5   : > { %v231_v42 = vsel %vm191_vm1, %v226_v38, %v201_v8  ;;  %v243_v27 = vand.u32 2147483647, %v235_v53  ;;  %v284_v29 = vand.u32 2147483647, %v276_v54  ;;  %v275_v30 = vsel %vm191_vm1, %v899_v20, %v267_v62 }
  0xb6   : > { %v239_v51 = vsub.f32 %v849_v2, %v231_v42  ;;  %v234_v13 = vsel %vm191_vm1, %v220_v63, %v899_v20  ;;  %v228_v14 = vsel %vm191_vm1, %v223_v12, %v891_v15  ;;  %v279_v40 = vsub.f32 %v852_v3, %v271_v22 }
  0xb7   : > { %v222_v41 = vsel %vm218_vm2, %v211_v35, %v213_v48  ;;  %v261_v20 = vsel %vm259_vm0, %v256_v24, %v258_v47  ;;  %v283_v42 = vsub.f32 %v861_v6, %v275_v30  ;;  %v292_v44 = vadd.f32 %v284_v29, %v243_v27  ;;  %v384_v27 = vld [vmem:[#allocation5] sm:$0xff] }
  0xb8   : > { %v247_v25 = vand.u32 2147483647, %v239_v51  ;;  %v242_v45 = vsub.f32 %v861_v6, %v234_v13  ;;  %v236_v26 = vsub.f32 %v854_v4, %v228_v14  ;;  %v263_v35 = vsel %vm259_vm0, %v254_v23, %v256_v24 }
  0xb9   : > { %v916_v32 = vpop.permute.xlu1 %304  ;;  %v918_v33 = vpop.permute.xlu0 %302  ;;  %v246_v53 = vand.u32 2147483647, %v238_v39  ;;  %v233_v18 = vsel %vm191_vm1, %v222_v41, %v901_v21  ;;  %v274_v23 = vsel %vm191_vm1, %v901_v21, %v261_v20  ;;  %v332_v57 = vadd.f32 %v324_v56, %v292_v44 }
  0xba   : > { %v349_v52 = vpop.permute.xlu2 %348  ;;  %v296_v43 = vadd.f32 %v288_v59, %v247_v25  ;;  %v291_v61 = vand.u32 2147483647, %v283_v42  ;;  %v278_v62 = vsub.f32 %v843_v0, %v270_v46  ;;  %v229_v63 = vsel %vm191_vm1, %v221_v34, %v885_v11 }
  0xbb   : > { %v360_v38 = vsub.f32 %v849_v2, %v349_v52  ;;  %v327_v22 = vand.u32 2147483647, %v319_v16  ;;  %v282_v25 = vsub.f32 %v863_v7, %v274_v23  ;;  %v244_v11 = vand.u32 2147483647, %v236_v26 }
  0xbc   : > { %v286_v19 = vand.u32 2147483647, %v278_v62  ;;  %v317_v30 = vsub.f32 %v854_v4, %v918_v33  ;;  %v322_v41 = vsub.f32 %v863_v7, %v893_v17  ;;  %v357_v26 = vsub.f32 %v854_v4, %v913_v28 }
  0xbd   : > { %v368_v50 = vand.u32 2147483647, %v360_v38 }
  0xc1   : > { %v956_v58 = vpop.permute.xlu1 %310  ;;  %v309_v60 = vpop.permute.xlu0 %308 }
  0xc2   : > { %v320_v8 = vsub.f32 %v849_v2, %v309_v60  ;;  %v269_v2 = vsel %vm191_vm1, %v891_v15, %v262_v36  ;;  %v287_v15 = vand.u32 2147483647, %v279_v40  ;;  %v355_v54 = vpop.permute.xlu2 %354  ;;  %v250_v60 = vand.u32 2147483647, %v242_v45 }
  0xc3   : > { %v363_v12 = vsub.f32 %v861_v6, %v355_v54  ;;  %v277_v24 = vsub.f32 %v854_v4, %v269_v2  ;;  %v290_v40 = vand.u32 2147483647, %v282_v25  ;;  %v321_v33 = vsub.f32 %v856_v5, %v956_v58 }
  0xc4   : > { %v328_v37 = vand.u32 2147483647, %v320_v8  ;;  %v273_v8 = vsel %vm191_vm1, %v883_v9, %v263_v35  ;;  %v295_v29 = vadd.f32 %v287_v15, %v246_v53  ;;  %v299_v34 = vadd.f32 %v291_v61, %v250_v60 }
  0xc5   : > { %v237_v9 = vsub.f32 %v843_v0, %v229_v63  ;;  %v285_v20 = vand.u32 2147483647, %v277_v24 }
  0xc6   : > { %v336_v49 = vadd.f32 %v328_v37, %v296_v43  ;;  %v371_v37 = vand.u32 2147483647, %v363_v12  ;;  %v335_v42 = vadd.f32 %v327_v22, %v295_v29  ;;  %v318_v43 = vsub.f32 %v843_v0, %v916_v32 }
  0xc7   : > { %v245_v45 = vand.u32 2147483647, %v237_v9  ;;  %v330_v32 = vand.u32 2147483647, %v322_v41 }
  0xc8   : > { %v376_v10 = vadd.f32 %v368_v50, %v336_v49  ;;  %v387_v49 = vld [vmem:[#allocation5 + $0x18] sm:$0xff]  ;;  %v326_v50 = vand.u32 2147483647, %v318_v43 }
  0xc9   : > { %v341_v47 = vpop.permute.xlu1 %340  ;;  %v315_v48 = vpop.permute.xlu0 %314  ;;  %v294_v53 = vadd.f32 %v286_v19, %v245_v45 }
  0xca   : > { %v356_v51 = vsub.f32 %v845_v1, %v341_v47  ;;  %v323_v52 = vsub.f32 %v861_v6, %v315_v48  ;;  %v240_v1 = vsub.f32 %v856_v5, %v952_v55  ;;  %v241_v55 = vsub.f32 %v863_v7, %v233_v18 }
  0xcb   : > { %v281_v6 = vsub.f32 %v856_v5, %v273_v8  ;;  %v293_v48 = vadd.f32 %v285_v20, %v244_v11  ;;  %v365_v18 = vand.u32 2147483647, %v357_v26  ;;  %v334_v61 = vadd.f32 %v326_v50, %v294_v53 }
  0xcc   : > { %v364_v59 = vand.u32 2147483647, %v356_v51  ;;  %v331_v56 = vand.u32 2147483647, %v323_v52  ;;  %v249_v39 = vand.u32 2147483647, %v241_v55 }
  0xcd   : > { %v289_v2 = vand.u32 2147483647, %v281_v6  ;;  %v248_v58 = vand.u32 2147483647, %v240_v1  ;;  %v329_v51 = vand.u32 2147483647, %v321_v33 }
  0xce   : > { %v372_v21 = vadd.f32 %v364_v59, %v332_v57  ;;  %v339_v36 = vadd.f32 %v331_v56, %v299_v34  ;;  %v298_v47 = vadd.f32 %v290_v40, %v249_v39  ;;  %v385_v56 = vld [vmem:[#allocation5 + $0x8] sm:$0xff] }
  0xcf   : > { %v297_v23 = vadd.f32 %v289_v2, %v248_v58 }
  0xd0   : > { %v380_v31 = vadd.f32 %v376_v10, %v372_v21  ;;  %v379_v17 = vadd.f32 %v371_v37, %v339_v36  ;;  %v338_v60 = vadd.f32 %v330_v32, %v298_v47 }
  0xd1   : > { %v347_v13 = vpop.permute.xlu1 %346  ;;  %v345_v14 = vpop.permute.xlu0 %344  ;;  %v337_v1 = vadd.f32 %v329_v51, %v297_v23 }
  0xd2   : > { %v388_v16 = vmul.f32 %v384_v27, %v380_v31  ;;  %v359_v38 = vsub.f32 %v852_v3, %v347_v13  ;;  %v325_v3 = vand.u32 2147483647, %v317_v30  ;;  %v358_v46 = vsub.f32 %v843_v0, %v345_v14 }
  0xd4   : > { %392 = vst [vmem:[%s1043_s8] sm:$0xff] %v388_v16  ;;  %v367_v44 = vand.u32 2147483647, %v359_v38  ;;  %v333_v15 = vadd.f32 %v325_v3, %v293_v48  ;;  %v366_v57 = vand.u32 2147483647, %v358_v46 }
  0xd6   : > { %v375_v35 = vadd.f32 %v367_v44, %v335_v42  ;;  %v373_v8 = vadd.f32 %v365_v18, %v333_v15  ;;  %v374_v10 = vadd.f32 %v366_v57, %v334_v61 }
  0xd8   : > { %v383_v52 = vadd.f32 %v379_v17, %v375_v35 }
  0xd9   : > { %v353_v4 = vpop.permute.xlu1 %352  ;;  %v351_v28 = vpop.permute.xlu0 %350 }
  0xda   : > { %v391_v54 = vmul.f32 %v387_v49, %v383_v52  ;;  %v362_v0 = vsub.f32 %v863_v7, %v353_v4  ;;  %v361_v59 = vsub.f32 %v856_v5, %v351_v28  ;;  %v386_v5 = vld [vmem:[#allocation5 + $0x10] sm:$0xff] }
  0xdc   : > { %395 = vst [vmem:[%s1043_s8 + $0x18] sm:$0xff] %v391_v54  ;;  %v370_v62 = vand.u32 2147483647, %v362_v0  ;;  %v369_v63 = vand.u32 2147483647, %v361_v59 }
  0xde   : > { %v378_v7 = vadd.f32 %v370_v62, %v338_v60  ;;  %v377_v21 = vadd.f32 %v369_v63, %v337_v1 }
  0xe0   : > { %v382_v12 = vadd.f32 %v378_v7, %v374_v10  ;;  %v381_v24 = vadd.f32 %v377_v21, %v373_v8 }
  0xe2   : > { %v390_v22 = vmul.f32 %v386_v5, %v382_v12  ;;  %v389_v55 = vmul.f32 %v385_v56, %v381_v24 }
  0xe4   : > { %394 = vst [vmem:[%s1043_s8 + $0x10] sm:$0xff] %v390_v22 }
  0xe5   : > { %393 = vst [vmem:[%s1043_s8 + $0x8] sm:$0xff] %v389_v55 }
  0xe6   : > { %664 = shalt.err (!%p661_p10)
}
  0xe7   : > { %s715_s30 = smov 128   ;;  %s716_s20 = smov 8  }
  0xe8   : > { %519 = dma.vmem_to_hbm [thread:$0]  (%p801_p3), %s410_s22, 512, %s412_s13, %s397_s26, %s715_s30, %s715_s30, %s716_s20  }
  0xe9 PF: > { %s426_s15 = sand.u32 1, %s695_s9   ;;  %p1096_p12 = scmp.ge.s32.totalorder %s707_s12, 2 }
  0xea   : > { %s427_s24 = scalar_lea.sflag [#allocation4], %s426_s15 }
  0xeb   : > { %p530_p13 = pnand %p1096_p12, %p767_p6 }
  0xed   : > { %p531_p0 = pneg %p530_p13 }
  0xef   : > { %690 = dma.done.wait (%p531_p0), %s427_s24, 512  }
  0xf0   : > { %692 = vsyncadd (%p531_p0), %s427_s24, 4294966784  ;;  %p16_p5 = scmp.ge.s32.totalorder %s785_s23, 4   ;;  %s1097_s9 = smov %s699_s10 }
  0xf1   : > { %s1098_s10 = smov %s703_s11  ;;  %s1099_s11 = smov %s797_s28 }
  0xf2   : > { %s1100_s12 = smov %s785_s23  ;;  %18 = sbr.rel (!%p16_p5) target bundleno = 6 (0x6), region = 77 }
  0xf7   :  { %433 = vsyncpa [#allocation3], 1 }
  0xf8   :  { %435 = vsyncpa [#allocation3 + $0x1], 1 }
  0xf9   :  { %436 = vsyncpa [#allocation6], 1 }
  0xfa   :  { %437 = vsyncpa [#allocation4], 1 }
  0xfb   :  { %439 = vsyncpa [#allocation4 + $0x1], 1 }

</bundles_post_ra>
